<compile_context>
chip_gen: v5e
topology: v5e:2x2
jax: 0.10.0
libtpu: 0.0.40
codegen_flags: <defaults>
</compile_context>

<pallas_src>
import functools

import jax
import jax.numpy as jnp
from jax.experimental import pallas as pl
from jax.experimental.pallas import tpu as pltpu

VMEM = pltpu.MemorySpace.VMEM


# ------------------------- fused Pallas kernel -------------------------

def _mlp_fix_kernel(x_ref, w1_ref, b1_ref, w2_ref, b2_ref, w3_ref, b3_ref,
                    o_ref):
    """Fused fc1 -> ReLU -> fc2 -> ReLU -> fc3. All operands live in VMEM."""
    x = x_ref[...]                                                  # (B, D_in)

    h = jnp.dot(x, w1_ref[...], preferred_element_type=jnp.float32)
    h = jnp.maximum(h + b1_ref[...], 0.0)                           # (B, H)

    h = jnp.dot(h, w2_ref[...], preferred_element_type=jnp.float32)
    h = jnp.maximum(h + b2_ref[...], 0.0)                           # (B, 128)

    y = jnp.dot(h, w3_ref[...], preferred_element_type=jnp.float32)
    o_ref[...] = (y + b3_ref[...]).astype(o_ref.dtype)              # (B, D_out)


def mlp_fix_forward(params, x, mask=None):
    """x: (B, input_dim, 1) (or (B, input_dim)); mask is unused (as in PyTorch)."""
    del mask  # matches the reference module: `mask` is never used in forward()

    # x.squeeze(-1)
    if x.ndim >= 2 and x.shape[-1] == 1:
        x = x.reshape(x.shape[:-1])
    B, d_in = x.shape
    d_out = params['w3'].shape[1]

    # TODO(synk): for large B, add a row-axis grid (lane-dense blocks) so the
    # kernel shards across TensorCores and respects v7x's 64 MiB VMEM; at these
    # toy shapes a single un-gridded block is optimal (one launch, zero
    # pipelining overhead).
    return pl.pallas_call(
        _mlp_fix_kernel,
        out_shape=jax.ShapeDtypeStruct((B, d_out), jnp.float32),
        in_specs=[pl.BlockSpec(memory_space=VMEM)] * 7,
        out_specs=pl.BlockSpec(memory_space=VMEM),
    )(
        x.astype(jnp.float32),
        params['w1'], params['b1'].reshape(1, -1),
        params['w2'], params['b2'].reshape(1, -1),
        params['w3'], params['b3'].reshape(1, -1),
    )


# ------------------------- pure-JAX reference -------------------------

def mlp_fix_reference(params, x, mask=None):
    del mask
    if x.ndim >= 2 and x.shape[-1] == 1:
        x = x.reshape(x.shape[:-1])
    h = jnp.maximum(x @ params['w1'] + params['b1'], 0.0)
    h = jnp.maximum(h @ params['w2'] + params['b2'], 0.0)
    return h @ params['w3'] + params['b3']


# ------------------------- parameter init -------------------------

def init_params(key, input_dim, hidden_dim, output_dim):
    k1, k2, k3 = jax.random.split(key, 3)

    def dense(k, shape):
        return jax.random.normal(k, shape, jnp.float32) * 0.05

    return {
        'w1': dense(k1, (input_dim, hidden_dim)),
        'b1': jnp.zeros((hidden_dim,), jnp.float32),
        'w2': dense(k2, (hidden_dim, 128)),
        'b2': jnp.zeros((128,), jnp.float32),
        'w3': dense(k3, (128, output_dim)),
        'b3': jnp.zeros((output_dim,), jnp.float32),
    }


# ------------------------- main -------------------------

if __name__ == "__main__":
    # MLP_fix(input_dim=16, hidden_dim=32, output_dim=8)
    B, INPUT_DIM, HIDDEN_DIM, OUTPUT_DIM = 2, 16, 32, 8

    key = jax.random.PRNGKey(0)
    k_params, k_x = jax.random.split(key)
    params = init_params(k_params, INPUT_DIM, HIDDEN_DIM, OUTPUT_DIM)

    # x carries a trailing singleton dim so that x.squeeze(-1) is meaningful,
    # exactly like the PyTorch forward.  mask is accepted but unused.
    x = jax.random.normal(k_x, (B, INPUT_DIM, 1), jnp.float32)
    mask = jnp.zeros((B, INPUT_DIM), dtype=bool)

    fwd = jax.jit(mlp_fix_forward)
    out = fwd(params, x, mask)
    jax.block_until_ready(out)

    ref = mlp_fix_reference(params, x, mask)
    assert out.shape == (B, OUTPUT_DIM), out.shape
    assert jnp.all(jnp.isfinite(out)), out
    assert jnp.allclose(out, ref, atol=1e-5, rtol=1e-5), (out, ref)
    print("KERNEL_OK")
</pallas_src>

<mosaic_0001>
module attributes {stable_mosaic.version = 11 : i64} {
  func.func @_mlp_fix_kernel(%arg0: memref<2x16xf32, #tpu.memory_space<vmem>>, %arg1: memref<16x32xf32, #tpu.memory_space<vmem>>, %arg2: memref<1x32xf32, #tpu.memory_space<vmem>>, %arg3: memref<32x128xf32, #tpu.memory_space<vmem>>, %arg4: memref<1x128xf32, #tpu.memory_space<vmem>>, %arg5: memref<128x8xf32, #tpu.memory_space<vmem>>, %arg6: memref<1x8xf32, #tpu.memory_space<vmem>>, %arg7: memref<2x8xf32, #tpu.memory_space<vmem>>) attributes {dimension_semantics = [], scalar_prefetch = 0 : i64, scratch_operands = 0 : i64, tpu.core_type = #tpu.core_type<tc>} {
    %c0 = arith.constant 0 : index
    %c0_0 = arith.constant 0 : index
    %0 = vector.load %arg0[%c0, %c0_0] : memref<2x16xf32, #tpu.memory_space<vmem>>, vector<2x16xf32>
    %c0_1 = arith.constant 0 : index
    %c0_2 = arith.constant 0 : index
    %1 = vector.load %arg1[%c0_1, %c0_2] : memref<16x32xf32, #tpu.memory_space<vmem>>, vector<16x32xf32>
    %cst = arith.constant dense<0.000000e+00> : vector<2x32xf32>
    %2 = tpu.matmul %0, %1, %cst {dimension_numbers = #tpu.dot_dimension_numbers<[1], [0], [0], [1], [0, 0, 1, 1], [], []>} : vector<2x16xf32>, vector<16x32xf32>, vector<2x32xf32> -> vector<2x32xf32>
    %c0_3 = arith.constant 0 : index
    %c0_4 = arith.constant 0 : index
    %3 = vector.load %arg2[%c0_3, %c0_4] : memref<1x32xf32, #tpu.memory_space<vmem>>, vector<1x32xf32>
    %4 = vector.broadcast %3 : vector<1x32xf32> to vector<2x32xf32>
    %5 = arith.addf %2, %4 : vector<2x32xf32>
    %cst_5 = arith.constant 0.000000e+00 : f32
    %6 = vector.broadcast %cst_5 : f32 to vector<2x32xf32>
    %7 = arith.maximumf %5, %6 : vector<2x32xf32>
    %c0_6 = arith.constant 0 : index
    %c0_7 = arith.constant 0 : index
    %8 = vector.load %arg3[%c0_6, %c0_7] : memref<32x128xf32, #tpu.memory_space<vmem>>, vector<32x128xf32>
    %cst_8 = arith.constant dense<0.000000e+00> : vector<2x128xf32>
    %9 = tpu.matmul %7, %8, %cst_8 {dimension_numbers = #tpu.dot_dimension_numbers<[1], [0], [0], [1], [0, 0, 1, 1], [], []>} : vector<2x32xf32>, vector<32x128xf32>, vector<2x128xf32> -> vector<2x128xf32>
    %c0_9 = arith.constant 0 : index
    %c0_10 = arith.constant 0 : index
    %10 = vector.load %arg4[%c0_9, %c0_10] : memref<1x128xf32, #tpu.memory_space<vmem>>, vector<1x128xf32>
    %11 = vector.broadcast %10 : vector<1x128xf32> to vector<2x128xf32>
    %12 = arith.addf %9, %11 : vector<2x128xf32>
    %cst_11 = arith.constant 0.000000e+00 : f32
    %13 = vector.broadcast %cst_11 : f32 to vector<2x128xf32>
    %14 = arith.maximumf %12, %13 : vector<2x128xf32>
    %c0_12 = arith.constant 0 : index
    %c0_13 = arith.constant 0 : index
    %15 = vector.load %arg5[%c0_12, %c0_13] : memref<128x8xf32, #tpu.memory_space<vmem>>, vector<128x8xf32>
    %cst_14 = arith.constant dense<0.000000e+00> : vector<2x8xf32>
    %16 = tpu.matmul %14, %15, %cst_14 {dimension_numbers = #tpu.dot_dimension_numbers<[1], [0], [0], [1], [0, 0, 1, 1], [], []>} : vector<2x128xf32>, vector<128x8xf32>, vector<2x8xf32> -> vector<2x8xf32>
    %c0_15 = arith.constant 0 : index
    %c0_16 = arith.constant 0 : index
    %17 = vector.load %arg6[%c0_15, %c0_16] : memref<1x8xf32, #tpu.memory_space<vmem>>, vector<1x8xf32>
    %18 = vector.broadcast %17 : vector<1x8xf32> to vector<2x8xf32>
    %19 = arith.addf %16, %18 : vector<2x8xf32>
    %c0_17 = arith.constant 0 : index
    %c0_18 = arith.constant 0 : index
    %20 = vector.load %arg7[%c0_17, %c0_18] : memref<2x8xf32, #tpu.memory_space<vmem>>, vector<2x8xf32>
    tpu.vector_store %arg7[%c0_17, %c0_18], %19 {strides = array<i32>} : memref<2x8xf32, #tpu.memory_space<vmem>>, vector<2x8xf32>,
    return
  }
}

</mosaic_0001>

<bundles_post_ra>
// kernel: mlp_fix_forward.1
= control target key start
LH: loop header
LB: loop body
LE: loop exit
PB: predicated region body
PF: predicated region fallthrough
CT: control target
= control target key end

     0   :  { %vm34_vm0 = vcmask 130048   ;;  %s304_s0 = inlined_call_operand.vmem [shape: f32[2,16], index: 0, kind: input, shape index: {}]   ;;  %s305_s1 = inlined_call_operand.vmem [shape: f32[16,32], index: 1, kind: input, shape index: {}]   ;;  %s306_s2 = inlined_call_operand.vmem [shape: f32[1,32], index: 2, kind: input, shape index: {}]   ;;  %s307_s3 = inlined_call_operand.vmem [shape: f32[32,128], index: 3, kind: input, shape index: {}]   ;;  %s308_s4 = inlined_call_operand.vmem [shape: f32[1,128], index: 4, kind: input, shape index: {}]   ;;  %s309_s5 = inlined_call_operand.vmem [shape: f32[128,8], index: 5, kind: input, shape index: {}]   ;;  %s310_s6 = inlined_call_operand.vmem [shape: f32[1,8], index: 6, kind: input, shape index: {}]   ;;  %s311_s7 = inlined_call_operand.hbm [shape: f32[2,8], index: 7, kind: output, shape index: {}]  }
   0x1   :  { %v29_v0 = vld [vmem:[%s305_s1 + $0x8] sm:$0xff]  ;;  %v28_v1 = vld [vmem:[%s305_s1] sm:$0xff]  ;;  %v62_v3 = vld [vmem:[%s307_s3 + $0x18] sm:$0xff] }
   0x2   :  { %52 = vmatpush.msra.mxu0 %v29_v0  ;;  %v27_v2 = vld [vmem:[%s304_s0] sm:$0x3]  ;;  %83 = vmatpush.msra.mxu1 %v62_v3 }
   0x3   :  { %12 = vsyncpa [#allocation3], 0  ;;  %v61_v4 = vld [vmem:[%s307_s3 + $0x10] sm:$0xff]  ;;  %v60_v5 = vld [vmem:[%s307_s3 + $0x8] sm:$0xff]  ;;  %vm67_vm1 = vcmask 261120   ;;  %s182_s23 = smov [#allocation2]  }
   0x4   :  { %53 = vmatpush.msra.mxu0 %v28_v1  ;;  %84 = vmatpush.msra.mxu1 %v61_v4  ;;  %v59_v6 = vld [vmem:[%s307_s3] sm:$0xff]  ;;  %v107_v7 = vld [vmem:[%s309_s5 + $0x78] sm:$0xff]  ;;  %v106_v8 = vld [vmem:[%s309_s5 + $0x70] sm:$0xff]  ;;  %s139_s24 = sshll.u32 %s182_s23, 4  ;;  %s141_s27 = sshll.u32 %s311_s7, 4  ;;  %vm132_vm2 = vcmask 58368   ;;  %s140_s24 = int_to_ptr.vmem [resolvable:$true] %s139_s24  ;;  %s142_s27 = int_to_ptr.hbm [resolvable:$true] %s141_s27 }
   0x5   :  { %150 = vmatmul.msk.f32.vlgmr.msra.gmra.mxu0 %vm34_vm0, %v27_v2  ;;  %112 = vmatpush.msra.mxu2 %v107_v7  ;;  %v105_v9 = vld [vmem:[%s309_s5 + $0x68] sm:$0xff]  ;;  %v104_v10 = vld [vmem:[%s309_s5 + $0x60] sm:$0xff]  ;;  %v103_v11 = vld [vmem:[%s309_s5 + $0x58] sm:$0xff] }
   0x6   :  { %85 = vmatpush.msra.mxu1 %v60_v5  ;;  %v102_v12 = vld [vmem:[%s309_s5 + $0x50] sm:$0xff]  ;;  %v101_v13 = vld [vmem:[%s309_s5 + $0x48] sm:$0xff]  ;;  %v100_v14 = vld [vmem:[%s309_s5 + $0x40] sm:$0xff] }
   0x7   :  { %113 = vmatpush.msra.mxu2 %v106_v8  ;;  %v99_v15 = vld [vmem:[%s309_s5 + $0x38] sm:$0xff]  ;;  %v98_v16 = vld [vmem:[%s309_s5 + $0x30] sm:$0xff]  ;;  %v97_v17 = vld [vmem:[%s309_s5 + $0x28] sm:$0xff] }
   0x8   :  { %86 = vmatpush.msra.mxu1 %v59_v6  ;;  %v96_v18 = vld [vmem:[%s309_s5 + $0x20] sm:$0xff]  ;;  %v95_v19 = vld [vmem:[%s309_s5 + $0x18] sm:$0xff]  ;;  %v94_v24 = vld [vmem:[%s309_s5 + $0x10] sm:$0xff] }
   0x9   :  { %114 = vmatpush.msra.mxu2 %v105_v9  ;;  %v153_v20 = vld [vmem:[%s306_s2] ss:$0 sm:$0xff]  ;;  %v93_v25 = vld [vmem:[%s309_s5 + $0x8] sm:$0xff] }
   0xa   :  { %v92_v26 = vld [vmem:[%s309_s5] sm:$0xff] }
   0xb   :  { %115 = vmatpush.msra.mxu2 %v104_v10  ;;  %v154_v27 = vld [vmem:[%s308_s4] ss:$0 sm:$0xff] }
   0xc   :  { %v155_v31 = vld [vmem:[%s310_s6] ss:$0 sm:$0xff] }
   0xd   :  { %116 = vmatpush.msra.mxu2 %v103_v11 }
   0xf   :  { %117 = vmatpush.msra.mxu2 %v102_v12 }
  0x11   :  { %118 = vmatpush.msra.mxu2 %v101_v13 }
  0x13   :  { %119 = vmatpush.msra.mxu2 %v100_v14 }
  0x15   :  { %120 = vmatpush.msra.mxu2 %v99_v15 }
  0x17   :  { %121 = vmatpush.msra.mxu2 %v98_v16 }
  0x19   :  { %122 = vmatpush.msra.mxu2 %v97_v17 }
  0x1b   :  { %123 = vmatpush.msra.mxu2 %v96_v18 }
  0x1d   :  { %124 = vmatpush.msra.mxu2 %v95_v19 }
  0x1f   :  { %125 = vmatpush.msra.mxu2 %v94_v24 }
  0x21   :  { %126 = vmatpush.msra.mxu2 %v93_v25 }
  0x23   :  { %127 = vmatpush.msra.mxu2 %v92_v26 }
  0x82   :  { %v55_v21 = vpop.f32.mrf.mxu0 }
  0x83   :  { %v56_v22 = vadd.f32 %v153_v20, %v55_v21 }
  0x85   :  { %v58_v23 = vmax.f32 %v56_v22, 0.0 }
  0x87   :  { %151 = vmatmul.msk.f32.vlgmr.msra.gmra.mxu1 %vm67_vm1, %v58_v23 }
 0x104   :  { %v88_v28 = vpop.f32.mrf.mxu1 }
 0x105   :  { %v89_v29 = vadd.f32 %v154_v27, %v88_v28 }
 0x107   :  { %v91_v30 = vmax.f32 %v89_v29, 0.0 }
 0x109   :  { %128 = vmatmul.f32.vlgmr.msra.gmra.mxu2 %v91_v30 }
 0x18c   :  { %v129_v32 = vpop.f32.mrf.mxu2 }
 0x18d   :  { %v130_v33 = vadd.f32 %v155_v31, %v129_v32 }
 0x18f   :  { %133 = vst.msk [vmem:[#allocation2] sm:$0x3] %vm132_vm2, %v130_v33 }
 0x190   :  { %144 = dma.vmem_to_hbm [thread:$0]  %s140_s24, 32, %s142_s27, [#allocation3]  }
 0x191   :  { %180 = dma.done.wait [#allocation3], 32  }
 0x192   :  { %181 = vsyncadd [#allocation3], 4294967264 }
 0x193   :  { %149 = vsyncpa [#allocation3], 1 }

</bundles_post_ra>
